<compile_context>
chip_gen: v7x
topology: tpu7x:2x2x1
jax: 0.10.0
libtpu: 0.0.40
codegen_flags: <defaults>
</compile_context>

<pallas_src>
import functools

import jax
import jax.numpy as jnp
import numpy as np
from jax.experimental import pallas as pl
from jax.experimental.pallas import tpu as pltpu


def _conv_ps_kernel(x_ref, w_ref, b_ref, alpha_ref, o_ref):
    """Conv3x3 (3 per-dy MXU matmuls) + bias + PReLU for a block of images.

    x_ref:     (nb, H+2, Kp)  zero-padded NHWC rows; lanes = (x, ci), zero-padded
    w_ref:     (3, Kp, NLp)   per-dy band of the conv matrix; lanes = (c, i, w, j)
    b_ref:     (1, NLp)       f32 bias row (same lane order)
    alpha_ref: (1,) SMEM      PReLU shared slope (nn.PReLU() default: one param)
    o_ref:     (nb, H, NLp)   lane-dense output rows
    """
    nb, H, _ = o_ref.shape
    alpha = alpha_ref[0]
    bias = b_ref[...]                                   # f32 (1, NLp)
    for b in range(nb):                                 # static: nb = block size
        # dy = 0, 1, 2: three sublane-shifted views of the padded image block,
        # each one accumulating MXU matmul (f32 accumulation).
        acc = jnp.dot(x_ref[b, 0:H, :], w_ref[0],
                      preferred_element_type=jnp.float32)
        acc = acc + jnp.dot(x_ref[b, 1:1 + H, :], w_ref[1],
                            preferred_element_type=jnp.float32)
        acc = acc + jnp.dot(x_ref[b, 2:2 + H, :], w_ref[2],
                            preferred_element_type=jnp.float32)
        acc = acc + bias                                # fused bias (f32)
        y = jnp.where(acc > 0, acc, alpha * acc)        # PReLU (f32 VPU)
        o_ref[b] = y.astype(o_ref.dtype)                # lane-dense store


def _round_up(v, m):
    return (v + m - 1) // m * m


def _batch_block(n_batch):
    """Batch block size: whole batch on 1-TC chips, per-image on megacore."""
    try:
        kind = jax.devices()[0].device_kind.lower()
    except Exception:
        kind = ""
    single_tc = any(t in kind for t in ("lite", "v5e", "v6e", "v6 lite", "v2", "v3"))
    if single_tc or n_batch < 2:
        return n_batch        # one grid step: grid is a serial loop on one TC
    return 1                  # >= 2 "parallel" steps for megacore (v4/v5p/v7x)


def upsample_block(x_nchw, w_oihw, bias, alpha, up_scale):
    """Forward of UpsampleBLock. x_nchw: (N, Cin, H, W) -> (N, Cin, H*r, W*r)."""
    N, Cin, H, W = x_nchw.shape
    r = int(up_scale)
    Cout = Cin * r * r
    assert w_oihw.shape == (Cout, Cin, 3, 3)
    dtype = x_nchw.dtype

    Kd = (W + 2) * Cin                 # true per-dy contraction width
    Kp = _round_up(Kd, 128)            # lane-dense (zero-padded) K
    NL = W * Cout                      # true output lane width
    NLp = _round_up(NL, 128)           # lane-dense (zero-padded) output width

    # --- padded NHWC input; lanes = (x, ci) zero-padded to Kp.
    # Single cheap XLA fusion; no 3x im2col is ever materialized in HBM.
    x_nhwc = jnp.transpose(x_nchw, (0, 2, 3, 1))
    x_pad = jnp.pad(x_nhwc, ((0, 0), (1, 1), (1, 1), (0, 0)))
    x_pad = x_pad.reshape(N, H + 2, Kd)
    x_pad = jnp.pad(x_pad, ((0, 0), (0, 0), (0, Kp - Kd)))

    # --- per-dy banded Toeplitz weights, output lanes ordered (c, i, w, j)
    # so the post-kernel PixelShuffle transpose copies contiguous W*r runs.
    # Wm[dy, x*Cin+ci, ((c*r+i)*W+w)*r+j] = w[c*r*r+i*r+j, ci, dy, x-w] if 0<=x-w<3
    w6 = w_oihw.reshape(Cin, r, r, Cin, 3, 3)                 # (c, i, j, ci, dy, kx)
    mask = (jnp.arange(W + 2)[:, None, None]
            == jnp.arange(W)[None, :, None] + jnp.arange(3)[None, None, :])
    Wm = jnp.einsum('xwk,cijnyk->yxnciwj', mask.astype(w_oihw.dtype), w6)
    Wm = Wm.reshape(3, Kd, NL)
    Wm = jnp.pad(Wm, ((0, 0), (0, Kp - Kd), (0, NLp - NL)))

    # --- f32 bias row (kept f32 per review; it is tiny), same lane order.
    b6 = bias.astype(jnp.float32).reshape(Cin, r, r)
    b_row = jnp.broadcast_to(b6[:, :, None, :], (Cin, r, W, r)).reshape(1, NL)
    b_row = jnp.pad(b_row, ((0, 0), (0, NLp - NL)))
    alpha1 = jnp.asarray(alpha, jnp.float32).reshape(1)

    nb = _batch_block(N)
    grid = (N // nb,)

    itemsize = np.dtype(dtype).itemsize
    cost = pl.CostEstimate(
        flops=2 * 3 * N * H * Kp * NLp,                       # actual MXU work
        transcendentals=0,
        bytes_accessed=(x_pad.size + Wm.size + N * H * NLp) * itemsize
                       + b_row.size * 4)

    conv_rows = pl.pallas_call(
        _conv_ps_kernel,
        out_shape=jax.ShapeDtypeStruct((N, H, NLp), dtype),
        grid=grid,
        in_specs=[
            pl.BlockSpec((nb, H + 2, Kp), lambda i: (i, 0, 0)),
            pl.BlockSpec((3, Kp, NLp), lambda i: (0, 0, 0)),
            pl.BlockSpec((1, NLp), lambda i: (0, 0)),
            pl.BlockSpec(memory_space=pltpu.MemorySpace.SMEM),
        ],
        out_specs=pl.BlockSpec((nb, H, NLp), lambda i: (i, 0, 0)),
        compiler_params=pltpu.CompilerParams(
            dimension_semantics=("parallel",),
            vmem_limit_bytes=32 * 1024 * 1024),
        cost_estimate=cost,
    )(x_pad, Wm, b_row, alpha1)

    # PixelShuffle + NCHW as one fused transpose over contiguous W*r runs:
    # lane = ((c*r + i)*W + w)*r + j  ->  out[n, c, h*r+i, w*r+j]
    y = conv_rows[:, :, :NL].reshape(N, H, Cin, r, W, r)
    y = jnp.transpose(y, (0, 2, 1, 3, 4, 5)).reshape(N, Cin, H * r, W * r)
    return y


def _reference(x_nchw, w_oihw, bias, alpha, up_scale):
    """Pure-JAX reference matching PyTorch semantics (for verification)."""
    N, Cin, H, W = x_nchw.shape
    r = up_scale
    y = jax.lax.conv_general_dilated(
        x_nchw, w_oihw, window_strides=(1, 1), padding=((1, 1), (1, 1)),
        dimension_numbers=("NCHW", "OIHW", "NCHW"))
    y = y + bias[None, :, None, None]
    y = y.reshape(N, Cin, r, r, H, W)
    y = jnp.transpose(y, (0, 1, 4, 2, 5, 3)).reshape(N, Cin, H * r, W * r)
    return jnp.where(y > 0, y, alpha * y)


if __name__ == "__main__":
    # Small shapes consistent with the module: batch=2, in_channels=4,
    # spatial=16x16, up_scale=2 -> conv out channels = 4 * 2^2 = 16.
    N, Cin, H, W = 2, 4, 16, 16
    up_scale = 2
    Cout = Cin * up_scale ** 2

    key = jax.random.PRNGKey(0)
    kx, kw, kb = jax.random.split(key, 3)

    x = jax.random.normal(kx, (N, Cin, H, W), jnp.float32)

    # Deterministic PyTorch-style init: U(-1/sqrt(fan_in), 1/sqrt(fan_in))
    fan_in = Cin * 3 * 3
    bound = 1.0 / np.sqrt(fan_in)
    w = jax.random.uniform(kw, (Cout, Cin, 3, 3), jnp.float32, -bound, bound)
    b = jax.random.uniform(kb, (Cout,), jnp.float32, -bound, bound)
    alpha = 0.25  # nn.PReLU() default init (single shared slope)

    fwd = jax.jit(functools.partial(upsample_block, up_scale=up_scale))
    out = fwd(x, w, b, alpha)
    out = jax.block_until_ready(out)

    assert out.shape == (N, Cin, H * up_scale, W * up_scale), out.shape

    ref = _reference(x, w, b, alpha, up_scale)
    np.testing.assert_allclose(np.asarray(out), np.asarray(ref),
                               rtol=1e-4, atol=1e-4)

    print("KERNEL_OK")
</pallas_src>

<mosaic_0001>
module attributes {stable_mosaic.version = 11 : i64} {
  func.func @_conv_ps_kernel(%arg0: i32, %arg1: memref<1x18x128xf32, #tpu.memory_space<vmem>>, %arg2: memref<3x128x256xf32, #tpu.memory_space<vmem>>, %arg3: memref<1x256xf32, #tpu.memory_space<vmem>>, %arg4: memref<1xf32, #tpu.memory_space<smem>>, %arg5: memref<1x16x256xf32, #tpu.memory_space<vmem>>) attributes {dimension_semantics = [#tpu.dimension_semantics<parallel>], iteration_bounds = array<i64: 2>, scalar_prefetch = 0 : i64, scratch_operands = 0 : i64, tpu.core_type = #tpu.core_type<tc>, window_params = [{transform_indices = @transform_0, window_bounds = array<i64: 1, 18, 128>}, {pipeline_mode = #tpu.pipeline_mode<synchronous>, transform_indices = @transform_1, window_bounds = array<i64: 3, 128, 256>}, {pipeline_mode = #tpu.pipeline_mode<synchronous>, transform_indices = @transform_2, window_bounds = array<i64: 1, 256>}, {transform_indices = @transform_3, window_bounds = array<i64: 1>}, {transform_indices = @transform_4, window_bounds = array<i64: 1, 16, 256>}]} {
    %c0 = arith.constant 0 : index
    %0 = memref.load %arg4[%c0] : memref<1xf32, #tpu.memory_space<smem>>
    %c0_0 = arith.constant 0 : index
    %c0_1 = arith.constant 0 : index
    %1 = vector.load %arg3[%c0_0, %c0_1] : memref<1x256xf32, #tpu.memory_space<vmem>>, vector<1x256xf32>
    %c0_2 = arith.constant 0 : index
    %c0_3 = arith.constant 0 : index
    %c0_4 = arith.constant 0 : index
    %2 = vector.load %arg1[%c0_2, %c0_3, %c0_4] : memref<1x18x128xf32, #tpu.memory_space<vmem>>, vector<1x16x128xf32>
    %3 = vector.shape_cast %2 : vector<1x16x128xf32> to vector<16x128xf32>
    %c0_5 = arith.constant 0 : index
    %c0_6 = arith.constant 0 : index
    %c0_7 = arith.constant 0 : index
    %4 = vector.load %arg2[%c0_5, %c0_6, %c0_7] : memref<3x128x256xf32, #tpu.memory_space<vmem>>, vector<1x128x256xf32>
    %5 = vector.shape_cast %4 : vector<1x128x256xf32> to vector<128x256xf32>
    %cst = arith.constant dense<0.000000e+00> : vector<16x256xf32>
    %6 = tpu.matmul %3, %5, %cst {dimension_numbers = #tpu.dot_dimension_numbers<[1], [0], [0], [1], [0, 0, 1, 1], [], []>} : vector<16x128xf32>, vector<128x256xf32>, vector<16x256xf32> -> vector<16x256xf32>
    %c0_8 = arith.constant 0 : index
    %c1 = arith.constant 1 : index
    %c0_9 = arith.constant 0 : index
    %7 = vector.load %arg1[%c0_8, %c1, %c0_9] : memref<1x18x128xf32, #tpu.memory_space<vmem>>, vector<1x16x128xf32>
    %8 = vector.shape_cast %7 : vector<1x16x128xf32> to vector<16x128xf32>
    %c1_10 = arith.constant 1 : index
    %c0_11 = arith.constant 0 : index
    %c0_12 = arith.constant 0 : index
    %9 = vector.load %arg2[%c1_10, %c0_11, %c0_12] : memref<3x128x256xf32, #tpu.memory_space<vmem>>, vector<1x128x256xf32>
    %10 = vector.shape_cast %9 : vector<1x128x256xf32> to vector<128x256xf32>
    %cst_13 = arith.constant dense<0.000000e+00> : vector<16x256xf32>
    %11 = tpu.matmul %8, %10, %cst_13 {dimension_numbers = #tpu.dot_dimension_numbers<[1], [0], [0], [1], [0, 0, 1, 1], [], []>} : vector<16x128xf32>, vector<128x256xf32>, vector<16x256xf32> -> vector<16x256xf32>
    %12 = arith.addf %6, %11 : vector<16x256xf32>
    %c0_14 = arith.constant 0 : index
    %c2 = arith.constant 2 : index
    %c0_15 = arith.constant 0 : index
    %13 = vector.load %arg1[%c0_14, %c2, %c0_15] : memref<1x18x128xf32, #tpu.memory_space<vmem>>, vector<1x16x128xf32>
    %14 = vector.shape_cast %13 : vector<1x16x128xf32> to vector<16x128xf32>
    %c2_16 = arith.constant 2 : index
    %c0_17 = arith.constant 0 : index
    %c0_18 = arith.constant 0 : index
    %15 = vector.load %arg2[%c2_16, %c0_17, %c0_18] : memref<3x128x256xf32, #tpu.memory_space<vmem>>, vector<1x128x256xf32>
    %16 = vector.shape_cast %15 : vector<1x128x256xf32> to vector<128x256xf32>
    %cst_19 = arith.constant dense<0.000000e+00> : vector<16x256xf32>
    %17 = tpu.matmul %14, %16, %cst_19 {dimension_numbers = #tpu.dot_dimension_numbers<[1], [0], [0], [1], [0, 0, 1, 1], [], []>} : vector<16x128xf32>, vector<128x256xf32>, vector<16x256xf32> -> vector<16x256xf32>
    %18 = arith.addf %12, %17 : vector<16x256xf32>
    %19 = vector.broadcast %1 : vector<1x256xf32> to vector<16x256xf32>
    %20 = arith.addf %18, %19 : vector<16x256xf32>
    %cst_20 = arith.constant 0.000000e+00 : f32
    %21 = vector.broadcast %cst_20 : f32 to vector<16x256xf32>
    %22 = arith.cmpf ogt, %20, %21 : vector<16x256xf32>
    %23 = vector.broadcast %0 : f32 to vector<16x256xf32>
    %24 = arith.mulf %23, %20 : vector<16x256xf32>
    %25 = arith.select %22, %20, %24 : vector<16x256xi1>, vector<16x256xf32>
    %c0_21 = arith.constant 0 : index
    %c0_22 = arith.constant 0 : index
    %c0_23 = arith.constant 0 : index
    %26 = vector.load %arg5[%c0_21, %c0_22, %c0_23] : memref<1x16x256xf32, #tpu.memory_space<vmem>>, vector<1x16x256xf32>
    %27 = vector.shape_cast %26 : vector<1x16x256xf32> to vector<16x256xf32>
    %28 = vector.shape_cast %25 : vector<16x256xf32> to vector<1x16x256xf32>
    tpu.vector_store %arg5[%c0_21, %c0_22, %c0_23], %28 {strides = array<i32>} : memref<1x16x256xf32, #tpu.memory_space<vmem>>, vector<1x16x256xf32>,
    return
  }
  func.func @transform_0(%arg0: i32) -> (i32, i32, i32) {
    %c0_i32 = arith.constant 0 : i32
    %c0_i32_0 = arith.constant 0 : i32
    %c0_i32_1 = arith.constant 0 : i32
    return %arg0, %c0_i32, %c0_i32_0 : i32, i32, i32
  }
  func.func @transform_1(%arg0: i32) -> (i32, i32, i32) {
    %c0_i32 = arith.constant 0 : i32
    %c0_i32_0 = arith.constant 0 : i32
    %c0_i32_1 = arith.constant 0 : i32
    %c0_i32_2 = arith.constant 0 : i32
    return %c0_i32, %c0_i32_0, %c0_i32_1 : i32, i32, i32
  }
  func.func @transform_2(%arg0: i32) -> (i32, i32) {
    %c0_i32 = arith.constant 0 : i32
    %c0_i32_0 = arith.constant 0 : i32
    %c0_i32_1 = arith.constant 0 : i32
    return %c0_i32, %c0_i32_0 : i32, i32
  }
  func.func @transform_3(%arg0: i32) -> i32 {
    %c0_i32 = arith.constant 0 : i32
    %c0_i32_0 = arith.constant 0 : i32
    return %c0_i32 : i32
  }
  func.func @transform_4(%arg0: i32) -> (i32, i32, i32) {
    %c0_i32 = arith.constant 0 : i32
    %c0_i32_0 = arith.constant 0 : i32
    %c0_i32_1 = arith.constant 0 : i32
    return %arg0, %c0_i32, %c0_i32_0 : i32, i32, i32
  }
}

</mosaic_0001>

<bundles_post_ra>
// kernel: upsample_block.1
= control target key start
LH: loop header
LB: loop body
LE: loop exit
PB: predicated region body
PF: predicated region fallthrough
CT: control target
= control target key end

     0   :  { %s869_s17 = smov 0   ;;  %s1205_s0 = inlined_call_operand.vmem [shape: f32[2,18,128], index: 0, kind: input, shape index: {}]   ;;  %s1206_s1 = inlined_call_operand.vmem [shape: f32[3,128,256], index: 1, kind: input, shape index: {}]   ;;  %s1207_s2 = inlined_call_operand.vmem [shape: f32[1,256], index: 2, kind: input, shape index: {}]   ;;  %s1208_s3 = inlined_call_operand.<no memory space> [shape: f32[1], index: 3, kind: input, shape index: {}]   ;;  %s1209_s4 = inlined_call_operand.vmem [shape: f32[2,16,256], index: 4, kind: output, shape index: {}]  }
   0x1   :  { %9 = sst [smem:[#allocation2]] %s1208_s3 }
   0x2 LB: > { %s627_s18 = sadd.s32 4294967295, %s838_s17   ;;  %p631_p0 = scmp.ge.s32.totalorder %s838_s17, 1  ;;  %s838_s17 = sphi %s869_s17, %s15_s17  }
   0x3   : > { %p163_p1 = scmp.lt.s32.totalorder %s838_s17, 3 }
   0x5   : > { %p164_p2 = pnand %p631_p0, %p163_p1 }
   0x6   : > { %v636_v0 = vld [vmem:[%s1206_s1 + $0x108] sm:$0xff] (!%p164_p2)  ;;  %v638_v1 = vld [vmem:[%s1206_s1 + $0x118] sm:$0xff] (!%p164_p2)  ;;  %v635_v5 = vld [vmem:[%s1206_s1 + $0x100] sm:$0xff] (!%p164_p2)  ;;  %v840_v7 = vmov (!%p164_p2), 0.0   ;;  %p1022_p3 = scmp.lt.s32.totalorder (!%p164_p2), %s627_s18, 1  ;;  %s199_s16 = sld [smem:[#allocation2]] (!%p164_p2) }
   0x7   : > { %167 = sbr.rel (%p164_p2) target bundleno = 295 (0x127), region = 36  ;;  %v204_v2 = vld [vmem:[%s1206_s1 + $0x8] sm:$0xff] (!%p164_p2)  ;;  %v702_v3 = vpack.c.bf16 (!%p164_p2), %v638_v1, %v636_v0  ;;  %v206_v4 = vld [vmem:[%s1206_s1 + $0x18] sm:$0xff] (!%p164_p2)  ;;  %v637_v6 = vld [vmem:[%s1206_s1 + $0x110] sm:$0xff] (!%p164_p2)  ;;  %334 = vmatprep.mubr.f32.mxu1 (!%p164_p2), %v840_v7  ;;  %411 = vmatprep.mubr.f32.mxu0 (!%p164_p2), %v840_v7 }
   0x8   : > { %v734_v8 = vpack.c.bf16 (!%p164_p2), %v206_v4, %v204_v2  ;;  %v704_v9 = vpack.c.bf16 (!%p164_p2), %v637_v6, %v635_v5  ;;  %v203_v10 = vld [vmem:[%s1206_s1] sm:$0xff] (!%p164_p2)  ;;  %v205_v11 = vld [vmem:[%s1206_s1 + $0x10] sm:$0xff] (!%p164_p2)  ;;  %v640_v12 = vld [vmem:[%s1206_s1 + $0x128] sm:$0xff] (!%p164_p2) }
   0x9   : > { %703 = vmatprep.subr.bf16.mxu1 (!%p164_p2), %v702_v3  ;;  %v736_v13 = vpack.c.bf16 (!%p164_p2), %v205_v11, %v203_v10  ;;  %v642_v14 = vld [vmem:[%s1206_s1 + $0x138] sm:$0xff] (!%p164_p2)  ;;  %v208_v15 = vld [vmem:[%s1206_s1 + $0x28] sm:$0xff] (!%p164_p2)  ;;  %v639_v19 = vld [vmem:[%s1206_s1 + $0x120] sm:$0xff] (!%p164_p2) }
   0xa   : > { %v210_v16 = vld [vmem:[%s1206_s1 + $0x38] sm:$0xff] (!%p164_p2)  ;;  %735 = vmatprep.subr.bf16.mxu0 (!%p164_p2), %v734_v8  ;;  %705 = vmatpush1.bf16.msra.mxu1 (!%p164_p2), %v704_v9  ;;  %v706_v17 = vpack.c.bf16 (!%p164_p2), %v642_v14, %v640_v12  ;;  %v641_v20 = vld [vmem:[%s1206_s1 + $0x130] sm:$0xff] (!%p164_p2)  ;;  %v207_v21 = vld [vmem:[%s1206_s1 + $0x20] sm:$0xff] (!%p164_p2) }
   0xb   : > { %v738_v18 = vpack.c.bf16 (!%p164_p2), %v210_v16, %v208_v15  ;;  %737 = vmatpush1.bf16.msra.mxu0 (!%p164_p2), %v736_v13  ;;  %v708_v22 = vpack.c.bf16 (!%p164_p2), %v641_v20, %v639_v19  ;;  %v209_v23 = vld [vmem:[%s1206_s1 + $0x30] sm:$0xff] (!%p164_p2)  ;;  %v644_v24 = vld [vmem:[%s1206_s1 + $0x148] sm:$0xff] (!%p164_p2)  ;;  %v646_v25 = vld [vmem:[%s1206_s1 + $0x158] sm:$0xff] (!%p164_p2) }
   0xc   : > { %707 = vmatprep.subr.bf16.mxu1 (!%p164_p2), %v706_v17  ;;  %v740_v26 = vpack.c.bf16 (!%p164_p2), %v209_v23, %v207_v21  ;;  %v710_v27 = vpack.c.bf16 (!%p164_p2), %v646_v25, %v644_v24  ;;  %v212_v28 = vld [vmem:[%s1206_s1 + $0x48] sm:$0xff] (!%p164_p2)  ;;  %v214_v29 = vld [vmem:[%s1206_s1 + $0x58] sm:$0xff] (!%p164_p2)  ;;  %v643_v30 = vld [vmem:[%s1206_s1 + $0x140] sm:$0xff] (!%p164_p2) }
   0xd   : > { %739 = vmatprep.subr.bf16.mxu0 (!%p164_p2), %v738_v18  ;;  %v742_v31 = vpack.c.bf16 (!%p164_p2), %v214_v29, %v212_v28  ;;  %v645_v32 = vld [vmem:[%s1206_s1 + $0x150] sm:$0xff] (!%p164_p2)  ;;  %v211_v33 = vld [vmem:[%s1206_s1 + $0x40] sm:$0xff] (!%p164_p2)  ;;  %v648_v36 = vld [vmem:[%s1206_s1 + $0x168] sm:$0xff] (!%p164_p2) }
   0xe   : > { %v213_v34 = vld [vmem:[%s1206_s1 + $0x50] sm:$0xff]  ;;  %709 = vmatpush1.bf16.msra.mxu1 %v708_v22  ;;  %v712_v35 = vpack.c.bf16 %v645_v32, %v643_v30  ;;  %v650_v37 = vld [vmem:[%s1206_s1 + $0x178] sm:$0xff]  ;;  %v216_v38 = vld [vmem:[%s1206_s1 + $0x68] sm:$0xff]  ;;  %s1212_s18 = smov (!%p1022_p3, %s627_s18), 1 }
   0xf   : > { %741 = vmatpush1.bf16.msra.mxu0 %v740_v26  ;;  %711 = vmatprep.subr.bf16.mxu1 %v710_v27  ;;  %v744_v39 = vpack.c.bf16 %v213_v34, %v211_v33  ;;  %v714_v40 = vpack.c.bf16 %v650_v37, %v648_v36  ;;  %v218_v41 = vld [vmem:[%s1206_s1 + $0x78] sm:$0xff]  ;;  %v647_v42 = vld [vmem:[%s1206_s1 + $0x160] sm:$0xff]  ;;  %v649_v43 = vld [vmem:[%s1206_s1 + $0x170] sm:$0xff]  ;;  %s822_s3 = smul.u32 24, %s1212_s18 }
  0x10   : > { %743 = vmatprep.subr.bf16.mxu0 %v742_v31  ;;  %v746_v44 = vpack.c.bf16 %v218_v41, %v216_v38  ;;  %v215_v45 = vld [vmem:[%s1206_s1 + $0x60] sm:$0xff]  ;;  %v217_v46 = vld [vmem:[%s1206_s1 + $0x70] sm:$0xff]  ;;  %v652_v47 = vld [vmem:[%s1206_s1 + $0x188] sm:$0xff]  ;;  %v716_v51 = vpack.c.bf16 %v649_v43, %v647_v42 }
  0x11   : > { %v654_v48 = vld [vmem:[%s1206_s1 + $0x198] sm:$0xff]  ;;  %v220_v49 = vld [vmem:[%s1206_s1 + $0x88] sm:$0xff]  ;;  %v748_v52 = vpack.c.bf16 %v217_v46, %v215_v45  ;;  %v651_v54 = vld [vmem:[%s1206_s1 + $0x180] sm:$0xff]  ;;  %s1093_s29 = scalar_lea.vmem %s1205_s0, %s822_s3 }
  0x12   : > { %v222_v50 = vld [vmem:[%s1206_s1 + $0x98] sm:$0xff]  ;;  %713 = vmatpush1.bf16.msra.mxu1 %v712_v35  ;;  %v718_v53 = vpack.c.bf16 %v654_v48, %v652_v47  ;;  %v653_v55 = vld [vmem:[%s1206_s1 + $0x190] sm:$0xff]  ;;  %v219_v56 = vld [vmem:[%s1206_s1 + $0x80] sm:$0xff] }
  0x13   : > { %745 = vmatpush1.bf16.msra.mxu0 %v744_v39  ;;  %715 = vmatprep.subr.bf16.mxu1 %v714_v40  ;;  %v750_v57 = vpack.c.bf16 %v222_v50, %v220_v49  ;;  %v221_v58 = vld [vmem:[%s1206_s1 + $0x90] sm:$0xff]  ;;  %v656_v59 = vld [vmem:[%s1206_s1 + $0x1a8] sm:$0xff]  ;;  %v658_v60 = vld [vmem:[%s1206_s1 + $0x1b8] sm:$0xff]  ;;  %v720_v63 = vpack.c.bf16 %v653_v55, %v651_v54 }
  0x14   : > { %747 = vmatprep.subr.bf16.mxu0 %v746_v44  ;;  %v224_v61 = vld [vmem:[%s1206_s1 + $0xa8] sm:$0xff]  ;;  %v226_v62 = vld [vmem:[%s1206_s1 + $0xb8] sm:$0xff]  ;;  %v752_v0 = vpack.c.bf16 %v221_v58, %v219_v56  ;;  %v722_v1 = vpack.c.bf16 %v658_v60, %v656_v59  ;;  %v655_v2 = vld [vmem:[%s1206_s1 + $0x1a0] sm:$0xff] }
  0x15   : > { %v657_v3 = vld [vmem:[%s1206_s1 + $0x1b0] sm:$0xff]  ;;  %v223_v4 = vld [vmem:[%s1206_s1 + $0xa0] sm:$0xff]  ;;  %v754_v5 = vpack.c.bf16 %v226_v62, %v224_v61  ;;  %v660_v8 = vld [vmem:[%s1206_s1 + $0x1c8] sm:$0xff] }
  0x16   : > { %717 = vmatpush1.bf16.msra.mxu1 %v716_v51  ;;  %v225_v6 = vld [vmem:[%s1206_s1 + $0xb0] sm:$0xff]  ;;  %v662_v9 = vld [vmem:[%s1206_s1 + $0x1d8] sm:$0xff]  ;;  %v228_v10 = vld [vmem:[%s1206_s1 + $0xc8] sm:$0xff]  ;;  %v724_v12 = vpack.c.bf16 %v657_v3, %v655_v2 }
  0x17   : > { %749 = vmatpush1.bf16.msra.mxu0 %v748_v52  ;;  %719 = vmatprep.subr.bf16.mxu1 %v718_v53  ;;  %v230_v11 = vld [vmem:[%s1206_s1 + $0xd8] sm:$0xff]  ;;  %v756_v13 = vpack.c.bf16 %v225_v6, %v223_v4  ;;  %v726_v14 = vpack.c.bf16 %v662_v9, %v660_v8  ;;  %v659_v15 = vld [vmem:[%s1206_s1 + $0x1c0] sm:$0xff]  ;;  %v661_v16 = vld [vmem:[%s1206_s1 + $0x1d0] sm:$0xff] }
  0x18   : > { %751 = vmatprep.subr.bf16.mxu0 %v750_v57  ;;  %v227_v17 = vld [vmem:[%s1206_s1 + $0xc0] sm:$0xff]  ;;  %v758_v18 = vpack.c.bf16 %v230_v11, %v228_v10  ;;  %v229_v19 = vld [vmem:[%s1206_s1 + $0xd0] sm:$0xff]  ;;  %v664_v20 = vld [vmem:[%s1206_s1 + $0x1e8] sm:$0xff]  ;;  %v728_v24 = vpack.c.bf16 %v661_v16, %v659_v15 }
  0x19   : > { %v666_v21 = vld [vmem:[%s1206_s1 + $0x1f8] sm:$0xff]  ;;  %v232_v22 = vld [vmem:[%s1206_s1 + $0xe8] sm:$0xff]  ;;  %v760_v25 = vpack.c.bf16 %v229_v19, %v227_v17  ;;  %v663_v27 = vld [vmem:[%s1206_s1 + $0x1e0] sm:$0xff] }
  0x1a   : > { %721 = vmatpush1.bf16.msra.mxu1 %v720_v63  ;;  %v234_v23 = vld [vmem:[%s1206_s1 + $0xf8] sm:$0xff]  ;;  %v730_v26 = vpack.c.bf16 %v666_v21, %v664_v20  ;;  %v665_v28 = vld [vmem:[%s1206_s1 + $0x1f0] sm:$0xff]  ;;  %v231_v29 = vld [vmem:[%s1206_s1 + $0xe0] sm:$0xff] }
  0x1b   : > { %753 = vmatpush1.bf16.msra.mxu0 %v752_v0  ;;  %723 = vmatprep.subr.bf16.mxu1 %v722_v1  ;;  %v762_v30 = vpack.c.bf16 %v234_v23, %v232_v22  ;;  %v233_v31 = vld [vmem:[%s1206_s1 + $0xf0] sm:$0xff]  ;;  %v668_v32 = vld [vmem:[%s1206_s1 + $0x208] sm:$0xff]  ;;  %v670_v33 = vld [vmem:[%s1206_s1 + $0x218] sm:$0xff]  ;;  %v732_v34 = vpack.c.bf16 %v665_v28, %v663_v27 }
  0x1c   : > { %755 = vmatprep.subr.bf16.mxu0 %v754_v5  ;;  %v764_v35 = vpack.c.bf16 %v233_v31, %v231_v29  ;;  %v766_v36 = vpack.c.bf16 %v670_v33, %v668_v32  ;;  %v667_v37 = vld [vmem:[%s1206_s1 + $0x200] sm:$0xff]  ;;  %v669_v38 = vld [vmem:[%s1206_s1 + $0x210] sm:$0xff]  ;;  %v672_v39 = vld [vmem:[%s1206_s1 + $0x228] sm:$0xff]  ;;  %v541_v32 = vlaneseq }
  0x1d   : > { %v674_v40 = vld [vmem:[%s1206_s1 + $0x238] sm:$0xff]  ;;  %v235_v41 = vld [vmem:[%s1093_s29 + $0x1] sm:$0xff]  ;;  %v768_v42 = vpack.c.bf16 %v669_v38, %v667_v37  ;;  %v673_v46 = vld [vmem:[%s1206_s1 + $0x230] sm:$0xff] }
  0x1e   : > { %725 = vmatpush1.bf16.msra.mxu1 %v724_v12  ;;  %v201_v43 = vld [vmem:[%s1093_s29] sm:$0xff]  ;;  %v770_v44 = vpack.c.bf16 %v674_v40, %v672_v39  ;;  %v676_v47 = vld [vmem:[%s1206_s1 + $0x248] sm:$0xff]  ;;  %v678_v48 = vld [vmem:[%s1206_s1 + $0x258] sm:$0xff]  ;;  %v542_v33 = vshrl.u32 %v541_v32, 7 }
  0x1f   : > { %757 = vmatpush1.bf16.msra.mxu0 %v756_v13  ;;  %727 = vmatprep.subr.bf16.mxu1 %v726_v14  ;;  %v671_v45 = vld [vmem:[%s1206_s1 + $0x220] sm:$0xff]  ;;  %v236_v50 = vld [vmem:[%s1093_s29 + $0x9] sm:$0xff]  ;;  %v774_v51 = vpack.c.bf16 %v678_v48, %v676_v47  ;;  %v682_v56 = vld [vmem:[%s1206_s1 + $0x278] sm:$0xff] }
  0x20   : > { %759 = vmatprep.subr.bf16.mxu0 %v758_v18  ;;  %v772_v49 = vpack.c.bf16 %v673_v46, %v671_v45  ;;  %v675_v52 = vld [vmem:[%s1206_s1 + $0x240] sm:$0xff]  ;;  %v677_v53 = vld [vmem:[%s1206_s1 + $0x250] sm:$0xff]  ;;  %v202_v54 = vld [vmem:[%s1093_s29 + $0x8] sm:$0xff] }
  0x21   : > { %v680_v55 = vld [vmem:[%s1206_s1 + $0x268] sm:$0xff]  ;;  %v776_v57 = vpack.c.bf16 %v677_v53, %v675_v52  ;;  %v679_v59 = vld [vmem:[%s1206_s1 + $0x260] sm:$0xff]  ;;  %v681_v60 = vld [vmem:[%s1206_s1 + $0x270] sm:$0xff] }
  0x22   : > { %729 = vmatpush1.bf16.msra.mxu1 %v728_v24  ;;  %v778_v58 = vpack.c.bf16 %v682_v56, %v680_v55  ;;  %v684_v61 = vld [vmem:[%s1206_s1 + $0x288] sm:$0xff]  ;;  %v686_v62 = vld [vmem:[%s1206_s1 + $0x298] sm:$0xff]  ;;  %v780_v63 = vpack.c.bf16 %v681_v60, %v679_v59  ;;  %v683_v1 = vld [vmem:[%s1206_s1 + $0x280] sm:$0xff] }
  0x23   : > { %761 = vmatpush1.bf16.msra.mxu0 %v760_v25  ;;  %731 = vmatprep.subr.bf16.mxu1 %v730_v26  ;;  %v782_v0 = vpack.c.bf16 %v686_v62, %v684_v61  ;;  %v685_v2 = vld [vmem:[%s1206_s1 + $0x290] sm:$0xff]  ;;  %v688_v3 = vld [vmem:[%s1206_s1 + $0x2a8] sm:$0xff]  ;;  %v687_v6 = vld [vmem:[%s1206_s1 + $0x2a0] sm:$0xff] }
  0x24   : > { %763 = vmatprep.subr.bf16.mxu0 %v762_v30  ;;  %v784_v4 = vpack.c.bf16 %v685_v2, %v683_v1  ;;  %v689_v8 = vld [vmem:[%s1206_s1 + $0x2b0] sm:$0xff]  ;;  %v692_v9 = vld [vmem:[%s1206_s1 + $0x2c8] sm:$0xff]  ;;  %v694_v10 = vld [vmem:[%s1206_s1 + $0x2d8] sm:$0xff] }
  0x25   : > { %v788_v11 = vpack.c.bf16 %v689_v8, %v687_v6  ;;  %v790_v12 = vpack.c.bf16 %v694_v10, %v692_v9  ;;  %v691_v13 = vld [vmem:[%s1206_s1 + $0x2c0] sm:$0xff]  ;;  %v693_v14 = vld [vmem:[%s1206_s1 + $0x2d0] sm:$0xff]  ;;  %v696_v15 = vld [vmem:[%s1206_s1 + $0x2e8] sm:$0xff] }
  0x26   : > { %733 = vmatpush1.bf16.msra.mxu1 %v732_v34  ;;  %v698_v16 = vld [vmem:[%s1206_s1 + $0x2f8] sm:$0xff]  ;;  %v792_v17 = vpack.c.bf16 %v693_v14, %v691_v13  ;;  %v695_v19 = vld [vmem:[%s1206_s1 + $0x2e0] sm:$0xff]  ;;  %v697_v20 = vld [vmem:[%s1206_s1 + $0x2f0] sm:$0xff]  ;;  %v543_v34 = vsub.s32 0, %v542_v33 }
  0x27   : > { %765 = vmatpush1.bf16.msra.mxu0 %v764_v35  ;;  %798 = vmatprep.subr.bf16.mxu1 %v766_v36  ;;  %v794_v18 = vpack.c.bf16 %v698_v16, %v696_v15  ;;  %v796_v21 = vpack.c.bf16 %v697_v20, %v695_v19  ;;  %v425_v22 = vld [vmem:[%s1093_s29 + $0xa] sm:$0xff]  ;;  %v424_v23 = vld [vmem:[%s1093_s29 + $0x2] sm:$0xff]  ;;  %v200_v35 = vld [vmem:[%s1207_s2] sm:$0x3]  ;;  %s701_s29 = sshll.u32 %s1212_s18, 5 }
  0x28   : > { %767 = vmatprep.subr.bf16.mxu0 %v766_v36  ;;  %v547_v36 = vsub.s32 1, %v542_v33  ;;  %v544_v37 = vrot.slane %v200_v35, %v543_v34  ;;  %s198_s22 = scalar_lea.vmem %s1209_s4, %s701_s29 }
  0x29   : > { %335 = vmatmul.mubr.f32.vlgmr.msra.gmra.mrb[0].mxu1 %v235_v41 }
  0x2a   : > { %412 = vmatmul.mubr.f32.vlgmr.msra.gmra.mrb[0].mxu0 %v201_v43  ;;  %806 = vmatpush1.bf16.msra.mxu1 %v768_v42  ;;  %v548_v39 = vrot.slane %v200_v35, %v547_v36 }
  0x2b   : > { %769 = vmatpush1.bf16.msra.mxu0 %v768_v42  ;;  %799 = vmatprep.subr.bf16.mxu1 %v770_v44 }
  0x2c   : > { %771 = vmatprep.subr.bf16.mxu0 %v770_v44  ;;  %340 = vmatprep.mubr.f32.mxu1 %v840_v7  ;;  %v559_v44 = vstv %s199_s16 }
  0x2d   : > { %417 = vmatprep.mubr.f32.mxu0 %v840_v7  ;;  %341 = vmatmul.mubr.f32.gmra.mrb[2].mxu1 %v236_v50 }
  0x2e   : > { %807 = vmatpush1.bf16.msra.mxu1 %v772_v49  ;;  %418 = vmatmul.mubr.f32.gmra.mrb[2].mxu0 %v202_v54 }
  0x2f   : > { %773 = vmatpush1.bf16.msra.mxu0 %v772_v49  ;;  %800 = vmatprep.subr.bf16.mxu1 %v774_v51 }
  0x30   : > { %775 = vmatprep.subr.bf16.mxu0 %v774_v51  ;;  %523 = vmatprep.mubr.f32.mxu0 %v840_v7 }
  0x31   : > { %529 = vmatprep.mubr.f32.mxu1 %v840_v7  ;;  %v690_v7 = vld [vmem:[%s1206_s1 + $0x2b8] sm:$0xff] }
  0x32   : > { %808 = vmatpush1.bf16.msra.mxu1 %v776_v57  ;;  %v786_v5 = vpack.c.bf16 %v690_v7, %v688_v3 }
  0x33   : > { %777 = vmatpush1.bf16.msra.mxu0 %v776_v57  ;;  %801 = vmatprep.subr.bf16.mxu1 %v778_v58 }
  0x34   : > { %779 = vmatprep.subr.bf16.mxu0 %v778_v58 }
  0x36   : > { %809 = vmatpush1.bf16.msra.mxu1 %v780_v63 }
  0x37   : > { %781 = vmatpush1.bf16.msra.mxu0 %v780_v63  ;;  %802 = vmatprep.subr.bf16.mxu1 %v782_v0 }
  0x38   : > { %783 = vmatprep.subr.bf16.mxu0 %v782_v0 }
  0x3a   : > { %810 = vmatpush1.bf16.msra.mxu1 %v784_v4 }
  0x3b   : > { %785 = vmatpush1.bf16.msra.mxu0 %v784_v4  ;;  %803 = vmatprep.subr.bf16.mxu1 %v786_v5 }
  0x3c   : > { %787 = vmatprep.subr.bf16.mxu0 %v786_v5 }
  0x3e   : > { %811 = vmatpush1.bf16.msra.mxu1 %v788_v11 }
  0x3f   : > { %789 = vmatpush1.bf16.msra.mxu0 %v788_v11  ;;  %804 = vmatprep.subr.bf16.mxu1 %v790_v12 }
  0x40   : > { %791 = vmatprep.subr.bf16.mxu0 %v790_v12 }
  0x42   : > { %812 = vmatpush1.bf16.msra.mxu1 %v792_v17 }
  0x43   : > { %793 = vmatpush1.bf16.msra.mxu0 %v792_v17  ;;  %805 = vmatprep.subr.bf16.mxu1 %v794_v18 }
  0x44   : > { %795 = vmatprep.subr.bf16.mxu0 %v794_v18 }
  0x46   : > { %813 = vmatpush1.bf16.msra.mxu1 %v796_v21 }
  0x47   : > { %797 = vmatpush1.bf16.msra.mxu0 %v796_v21 }
  0x49   : > { %530 = vmatmul.mubr.f32.vlgmr.msra.gmra.mrb[4].mxu1 %v425_v22 }
  0x4a   : > { %524 = vmatmul.mubr.f32.vlgmr.msra.gmra.mrb[0].mxu0 %v424_v23 }
  0xfc   : > { %v336_v24 = vpop.f32.mrb[0].mxu1 }
  0xfd   : > { %v338_v25 = vpop.f32.mrb[1].mxu1 }
 0x100   : > { %v342_v26 = vpop.f32.mrb[2].mxu1 }
 0x101   : > { %v419_v27 = vpop.f32.mrb[2].mxu0  ;;  %v344_v28 = vpop.f32.mrb[3].mxu1 }
 0x102   : > { %v420_v29 = vadd.f32 %v419_v27, %v342_v26  ;;  %v421_v30 = vpop.f32.mrb[3].mxu0 }
 0x103   : > { %v422_v31 = vadd.f32 %v421_v30, %v344_v28 }
 0x11c   : > { %v531_v38 = vpop.f32.mrb[4].mxu1 }
 0x11d   : > { %v525_v40 = vpop.f32.mrb[0].mxu0  ;;  %v538_v41 = vadd.f32 %v531_v38, %v420_v29  ;;  %v533_v42 = vpop.f32.mrb[5].mxu1 }
 0x11e   : > { %v814_v43 = vadd.f32 %v525_v40, %v336_v24  ;;  %v527_v45 = vpop.f32.mrb[1].mxu0  ;;  %v539_v46 = vadd.f32 %v533_v42, %v422_v31 }
 0x11f   : > { %v553_v47 = vadd.f32 %v544_v37, %v538_v41  ;;  %v815_v48 = vadd.f32 %v527_v45, %v338_v25 }
 0x120   : > { %v551_v49 = vadd.f32 %v814_v43, %v544_v37  ;;  %v554_v50 = vadd.f32 %v548_v39, %v539_v46 }
 0x121   : > { %vm557_vm0 = vcmp.gt.f32.partialorder %v553_v47, 0.0  ;;  %v562_v51 = vmul.f32 %v559_v44, %v553_v47  ;;  %v552_v52 = vadd.f32 %v815_v48, %v548_v39 }
 0x122   : > { %vm555_vm1 = vcmp.gt.f32.partialorder %v551_v49, 0.0  ;;  %v560_v53 = vmul.f32 %v559_v44, %v551_v49  ;;  %vm558_vm2 = vcmp.gt.f32.partialorder %v554_v50, 0.0  ;;  %v563_v54 = vmul.f32 %v559_v44, %v554_v50 }
 0x123   : > { %v566_v55 = vsel %vm557_vm0, %v553_v47, %v562_v51  ;;  %vm556_vm3 = vcmp.gt.f32.partialorder %v552_v52, 0.0  ;;  %v561_v56 = vmul.f32 %v559_v44, %v552_v52 }
 0x124   : > { %v564_v57 = vsel %vm555_vm1, %v551_v49, %v560_v53  ;;  %570 = vst [vmem:[%s198_s22 + $0x10] sm:$0xff] %v566_v55  ;;  %v567_v58 = vsel %vm558_vm2, %v554_v50, %v563_v54 }
 0x125   : > { %568 = vst [vmem:[%s198_s22] sm:$0xff] %v564_v57  ;;  %v565_v59 = vsel %vm556_vm3, %v552_v52, %v561_v56  ;;  %571 = vst [vmem:[%s198_s22 + $0x18] sm:$0xff] %v567_v58 }
 0x126   : > { %569 = vst [vmem:[%s198_s22 + $0x8] sm:$0xff] %v565_v59 }
 0x127 PF: > { %s15_s17 = sadd.s32 1, %s838_s17  }
 0x128   : > { %p12_p4 = scmp.ge.s32.totalorder %s15_s17, 4  }
 0x12a   :  { %14 = sbr.rel (!%p12_p4) target bundleno = 2 (0x2), region = 68 }

</bundles_post_ra>
